<compile_context>
chip_gen: v6e
topology: v6e:2x2x1
jax: 0.10.0
libtpu: 0.0.40
codegen_flags: <defaults>
</compile_context>

<pallas_src>
import math

import jax
import jax.numpy as jnp
from jax.experimental import pallas as pl
from jax.experimental.pallas import tpu as pltpu


def _round_up(x, m):
    return -(-x // m) * m


def make_to_rgb(in_channels, out_channels, H, W, w_dim, negative_slope=0.2):
    k = 1  # ToRGB uses kernel_size=1
    gain = 1.0 / math.sqrt(in_channels * k * k)       # ToRGB.gain (cancels, kept for ref)
    scale = 1.0 / math.sqrt(in_channels * k * k)      # StyleWSConv.scale
    weight_gain = 1.0 / math.sqrt(w_dim)              # WSLinear.weight_gain
    bias_gain = 1.0                                   # WSLinear.bias_gain (lr_scaler=1)
    hw = H * W
    c_out_pad = _round_up(out_channels, 8)

    # ---- pixel-tile size: largest lane-aligned tile whose double-buffered
    # x + out tiles fit a budget that leaves headroom on v7x/v6e/v5e. ----
    bytes_per_el = 4  # f32 I/O
    data_budget = 16 * 1024 * 1024
    max_thw = data_budget // (2 * (in_channels + c_out_pad) * bytes_per_el)
    thw = min(max(128, (max_thw // 128) * 128), 8192)
    if hw <= thw:
        thw = hw                       # single full-dim tile (always a legal block)
    hw_pad = _round_up(hw, thw)
    n_tiles = hw_pad // thw

    def kernel(s_ref, w_ref, b_ref, x_ref, o_ref):
        # s_ref : (1, 1, C_in)        normalized style row for this batch
        # w_ref : (C_out_pad, C_in)   pre-normalized weight, both scales folded
        # b_ref : (C_out_pad, 1)      conv bias (zero-padded rows)
        # x_ref : (1, C_in, THW)
        # o_ref : (1, C_out_pad, THW)
        w_mod = w_ref[...] * s_ref[0]                              # (C_out_pad, C_in)
        out = jnp.dot(w_mod, x_ref[0],
                      preferred_element_type=jnp.float32)          # (C_out_pad, THW)
        out = out + b_ref[...]
        out = jnp.where(out >= 0.0, out, negative_slope * out)     # LeakyReLU(0.2)
        o_ref[0] = out.astype(o_ref.dtype)

    def forward(x, style, aff_w, aff_b, conv_w, conv_b):
        """x: [B, C_in, H, W] (NCHW), style: [B, w_dim]. Returns [B, C_out, H, W]."""
        B = x.shape[0]

        # ---- tiny batch/pixel-invariant preprocessing, hoisted out of the kernel ----
        # WSLinear affine: s = (style * weight_gain) @ aff_w.T + aff_b * bias_gain
        s = (style * weight_gain) @ aff_w.T + aff_b[None, :] * bias_gain   # (B, C_in)
        # ToRGB's `* gain` is a positive scalar and cancels exactly under the
        # inf-norm normalization below, so it is dropped.
        s = s / jnp.max(jnp.abs(s), axis=1, keepdims=True)
        s3 = s.reshape(B, 1, in_channels).astype(x.dtype)

        # StyleWSConv: w * scale / ||w||_inf per output channel; fold the
        # activation-path scale (x * scale in the PyTorch source) in as well.
        w = conv_w.reshape(out_channels, in_channels)
        w = w * scale / jnp.max(jnp.abs(w), axis=1, keepdims=True)
        w_eff = (w * scale).astype(x.dtype)                        # both scales folded
        w_eff = jnp.pad(w_eff, ((0, c_out_pad - out_channels), (0, 0)))
        bias2 = jnp.pad(conv_b.reshape(out_channels, 1),
                        ((0, c_out_pad - out_channels), (0, 0))).astype(x.dtype)

        # ---- data layout: channels on sublanes, flattened pixels on lanes ----
        x3 = x.reshape(B, in_channels, hw)
        if hw_pad != hw:
            x3 = jnp.pad(x3, ((0, 0), (0, 0), (0, hw_pad - hw)))

        cost = pl.CostEstimate(
            flops=2 * B * out_channels * in_channels * hw,
            transcendentals=0,
            bytes_accessed=bytes_per_el * B * (in_channels + out_channels) * hw,
        )

        out = pl.pallas_call(
            kernel,
            out_shape=jax.ShapeDtypeStruct((B, c_out_pad, hw_pad), x.dtype),
            grid=(B, n_tiles),
            in_specs=[
                pl.BlockSpec((1, 1, in_channels), lambda b, t: (b, 0, 0)),
                pl.BlockSpec((c_out_pad, in_channels), lambda b, t: (0, 0)),
                pl.BlockSpec((c_out_pad, 1), lambda b, t: (0, 0)),
                pl.BlockSpec((1, in_channels, thw), lambda b, t: (b, 0, t)),
            ],
            out_specs=pl.BlockSpec((1, c_out_pad, thw), lambda b, t: (b, 0, t)),
            compiler_params=pltpu.CompilerParams(
                dimension_semantics=("parallel", "parallel"),
                vmem_limit_bytes=32 * 1024 * 1024,
            ),
            cost_estimate=cost,
        )(s3, w_eff, bias2, x3)

        return out[:, :out_channels, :hw].reshape(B, out_channels, H, W)

    def reference(x, style, aff_w, aff_b, conv_w, conv_b):
        """Pure-JAX reference mirroring the PyTorch forward exactly."""
        s = (style * weight_gain) @ aff_w.T + aff_b[None, :] * bias_gain
        s = s * gain
        s = s / jnp.max(jnp.abs(s), axis=1, keepdims=True)
        w = conv_w.reshape(out_channels, in_channels)
        w = w * scale / jnp.max(jnp.abs(w), axis=1, keepdims=True)
        w_mod = w[None, :, :] * s[:, None, :]                      # (B, C_out, C_in)
        out = jnp.einsum("boi,bihw->bohw", w_mod, x * scale)
        out = out + conv_b.reshape(1, out_channels, 1, 1)
        return jnp.where(out >= 0.0, out, negative_slope * out)

    return forward, reference


if __name__ == "__main__":
    B, C_in, C_out, H, W, W_DIM = 2, 16, 3, 16, 16, 32

    key = jax.random.PRNGKey(0)
    k1, k2, k3, k4 = jax.random.split(key, 4)

    # Inputs
    x = jax.random.normal(k1, (B, C_in, H, W), dtype=jnp.float32)
    style = jax.random.normal(k2, (B, W_DIM), dtype=jnp.float32)

    # Parameters (deterministic init mirroring the module's __init__):
    #   WSLinear: weight ~ N(0,1) shape [C_in, W_DIM], bias filled with 1.0
    #   StyleWSConv: weight ~ N(0,1) shape [C_out, C_in, 1, 1], bias zeros
    aff_w = jax.random.normal(k3, (C_in, W_DIM), dtype=jnp.float32)
    aff_b = jnp.ones((C_in,), dtype=jnp.float32)
    conv_w = jax.random.normal(k4, (C_out, C_in, 1, 1), dtype=jnp.float32)
    conv_b = jnp.zeros((C_out,), dtype=jnp.float32)

    forward, reference = make_to_rgb(C_in, C_out, H, W, W_DIM)

    out = jax.jit(forward)(x, style, aff_w, aff_b, conv_w, conv_b)
    out = jax.block_until_ready(out)

    ref = reference(x, style, aff_w, aff_b, conv_w, conv_b)
    assert out.shape == (B, C_out, H, W)
    assert jnp.allclose(out, ref, atol=1e-4, rtol=1e-4), "mismatch vs reference"

    print("KERNEL_OK")
</pallas_src>

<mosaic_0001>
module attributes {stable_mosaic.version = 11 : i64} {
  func.func @kernel(%arg0: i32, %arg1: i32, %arg2: memref<1x1x16xf32, #tpu.memory_space<vmem>>, %arg3: memref<8x16xf32, #tpu.memory_space<vmem>>, %arg4: memref<8x1xf32, #tpu.memory_space<vmem>>, %arg5: memref<1x16x256xf32, #tpu.memory_space<vmem>>, %arg6: memref<1x8x256xf32, #tpu.memory_space<vmem>>) attributes {dimension_semantics = [#tpu.dimension_semantics<parallel>, #tpu.dimension_semantics<parallel>], iteration_bounds = array<i64: 2, 1>, scalar_prefetch = 0 : i64, scratch_operands = 0 : i64, tpu.core_type = #tpu.core_type<tc>, window_params = [{transform_indices = @transform_0, window_bounds = array<i64: 1, 1, 16>}, {pipeline_mode = #tpu.pipeline_mode<synchronous>, transform_indices = @transform_1, window_bounds = array<i64: 8, 16>}, {pipeline_mode = #tpu.pipeline_mode<synchronous>, transform_indices = @transform_2, window_bounds = array<i64: 8, 1>}, {transform_indices = @transform_3, window_bounds = array<i64: 1, 16, 256>}, {transform_indices = @transform_4, window_bounds = array<i64: 1, 8, 256>}]} {
    %c0 = arith.constant 0 : index
    %c0_0 = arith.constant 0 : index
    %0 = vector.load %arg3[%c0, %c0_0] : memref<8x16xf32, #tpu.memory_space<vmem>>, vector<8x16xf32>
    %c0_1 = arith.constant 0 : index
    %c0_2 = arith.constant 0 : index
    %c0_3 = arith.constant 0 : index
    %1 = vector.load %arg2[%c0_1, %c0_2, %c0_3] : memref<1x1x16xf32, #tpu.memory_space<vmem>>, vector<1x1x16xf32>
    %2 = vector.shape_cast %1 : vector<1x1x16xf32> to vector<1x16xf32>
    %3 = vector.broadcast %2 : vector<1x16xf32> to vector<8x16xf32>
    %4 = arith.mulf %0, %3 : vector<8x16xf32>
    %c0_4 = arith.constant 0 : index
    %c0_5 = arith.constant 0 : index
    %c0_6 = arith.constant 0 : index
    %5 = vector.load %arg5[%c0_4, %c0_5, %c0_6] : memref<1x16x256xf32, #tpu.memory_space<vmem>>, vector<1x16x256xf32>
    %6 = vector.shape_cast %5 : vector<1x16x256xf32> to vector<16x256xf32>
    %cst = arith.constant dense<0.000000e+00> : vector<8x256xf32>
    %7 = tpu.matmul %4, %6, %cst {dimension_numbers = #tpu.dot_dimension_numbers<[1], [0], [0], [1], [0, 0, 1, 1], [], []>} : vector<8x16xf32>, vector<16x256xf32>, vector<8x256xf32> -> vector<8x256xf32>
    %c0_7 = arith.constant 0 : index
    %c0_8 = arith.constant 0 : index
    %8 = vector.load %arg4[%c0_7, %c0_8] : memref<8x1xf32, #tpu.memory_space<vmem>>, vector<8x1xf32>
    %9 = vector.broadcast %8 : vector<8x1xf32> to vector<8x256xf32>
    %10 = arith.addf %7, %9 : vector<8x256xf32>
    %cst_9 = arith.constant 0.000000e+00 : f32
    %11 = vector.broadcast %cst_9 : f32 to vector<8x256xf32>
    %12 = arith.cmpf oge, %10, %11 : vector<8x256xf32>
    %cst_10 = arith.constant 2.000000e-01 : f32
    %13 = vector.broadcast %cst_10 : f32 to vector<8x256xf32>
    %14 = arith.mulf %13, %10 : vector<8x256xf32>
    %15 = arith.select %12, %10, %14 : vector<8x256xi1>, vector<8x256xf32>
    %c0_11 = arith.constant 0 : index
    %c0_12 = arith.constant 0 : index
    %c0_13 = arith.constant 0 : index
    %16 = vector.load %arg6[%c0_11, %c0_12, %c0_13] : memref<1x8x256xf32, #tpu.memory_space<vmem>>, vector<1x8x256xf32>
    %17 = vector.shape_cast %16 : vector<1x8x256xf32> to vector<8x256xf32>
    %18 = vector.shape_cast %15 : vector<8x256xf32> to vector<1x8x256xf32>
    tpu.vector_store %arg6[%c0_11, %c0_12, %c0_13], %18 {strides = array<i32>} : memref<1x8x256xf32, #tpu.memory_space<vmem>>, vector<1x8x256xf32>,
    return
  }
  func.func @transform_0(%arg0: i32, %arg1: i32) -> (i32, i32, i32) {
    %c0_i32 = arith.constant 0 : i32
    %c0_i32_0 = arith.constant 0 : i32
    %c0_i32_1 = arith.constant 0 : i32
    return %arg0, %c0_i32, %c0_i32_0 : i32, i32, i32
  }
  func.func @transform_1(%arg0: i32, %arg1: i32) -> (i32, i32) {
    %c0_i32 = arith.constant 0 : i32
    %c0_i32_0 = arith.constant 0 : i32
    %c0_i32_1 = arith.constant 0 : i32
    return %c0_i32, %c0_i32_0 : i32, i32
  }
  func.func @transform_2(%arg0: i32, %arg1: i32) -> (i32, i32) {
    %c0_i32 = arith.constant 0 : i32
    %c0_i32_0 = arith.constant 0 : i32
    %c0_i32_1 = arith.constant 0 : i32
    return %c0_i32, %c0_i32_0 : i32, i32
  }
  func.func @transform_3(%arg0: i32, %arg1: i32) -> (i32, i32, i32) {
    %c0_i32 = arith.constant 0 : i32
    %c0_i32_0 = arith.constant 0 : i32
    return %arg0, %c0_i32, %arg1 : i32, i32, i32
  }
  func.func @transform_4(%arg0: i32, %arg1: i32) -> (i32, i32, i32) {
    %c0_i32 = arith.constant 0 : i32
    %c0_i32_0 = arith.constant 0 : i32
    return %arg0, %c0_i32, %arg1 : i32, i32, i32
  }
}

</mosaic_0001>

<bundles_post_ra>
// kernel: forward.1
= control target key start
LH: loop header
LB: loop body
LE: loop exit
PB: predicated region body
PF: predicated region fallthrough
CT: control target
= control target key end

     0   :  { %s542_s15 = smov 0   ;;  %s544_s16 = smov 0   ;;  %s584_s0 = inlined_call_operand.vmem [shape: f32[2,1,16], index: 0, kind: input, shape index: {}]   ;;  %s585_s1 = inlined_call_operand.vmem [shape: f32[8,16], index: 1, kind: input, shape index: {}]   ;;  %s586_s2 = inlined_call_operand.vmem [shape: f32[8,1], index: 2, kind: input, shape index: {}]   ;;  %s587_s3 = inlined_call_operand.vmem [shape: f32[2,16,256], index: 3, kind: input, shape index: {}]   ;;  %s588_s4 = inlined_call_operand.vmem [shape: f32[2,8,256], index: 4, kind: output, shape index: {}]  }
   0x1   :  { %s546_s17 = smov 0  }
   0x2 LB: > { %s26_s18 = sadd.s32 1, %s509_s16  ;;  %p453_p0 = scmp.ge.s32.totalorder %s513_s17, 1  ;;  %s513_s17 = sphi %s546_s17, %s14_s17   ;;  %s509_s16 = sphi %s544_s16, %s590_s16   ;;  %s505_s15 = sphi %s542_s15, %s589_s15  }
   0x3   : > { %p28_p1 = scmp.ge.s32.totalorder %s26_s18, 2  ;;  %p191_p2 = scmp.lt.s32.totalorder %s513_s17, 3 }
   0x5   : > { %s592_s18 = smov (%p28_p1, %s26_s18), 0  ;;  %p192_p3 = pnand %p453_p0, %p191_p2 }
   0x6   : > { %p228_p4 = scmp.lt.s32.totalorder (!%p192_p3), %s505_s15, 1 }
   0x7   : > { %195 = sbr.rel (%p192_p3) target bundleno = 221 (0xdd), region = 36 }
   0xc   : > { %v264_v0 = vld [vmem:[%s586_s2] sm:$0xff]  ;;  %v515_v1 = vmov 0.0   ;;  %v516_v2 = vmov 0   ;;  %s594_s15 = smov (!%p228_p4, %s505_s15), 1  ;;  %vm270_vm0 = vcmask 130048  }
   0xd   : > { %338 = vmatprep.mubr.f32.mxu0 %v515_v1  ;;  %490 = vset.pattern.permute.xlu0 %v516_v2  ;;  %s462_s21 = sshll.u32 %s594_s15, 5  ;;  %s230_s24 = scalar_lea.vmem %s584_s0, %s594_s15  ;;  %v251_v3 = vld [vmem:[%s585_s1] sm:$0xff] }
   0xe   : > { %267 = vperm.xlu0 %490, %v264_v0   ;;  %s239_s29 = scalar_lea.vmem %s587_s3, %s462_s21  ;;  %v458_v4 = vld [vmem:[%s230_s24] ss:$0 sm:$0xff]  ;;  %s463_s30 = sshll.u32 %s594_s15, 4 }
   0xf   : > { %v263_v5 = vld [vmem:[%s239_s29 + $0x18] sm:$0xff]  ;;  %v262_v6 = vld [vmem:[%s239_s29 + $0x10] sm:$0xff]  ;;  %v261_v7 = vld [vmem:[%s239_s29 + $0x8] sm:$0xff]  ;;  %v259_v9 = vmul.f32 %v458_v4, %v251_v3  ;;  %s249_s7 = scalar_lea.vmem %s588_s4, %s463_s30 }
  0x10   : > { %302 = vmatprep.subr.mxu0 %v263_v5  ;;  %v260_v8 = vld [vmem:[%s239_s29] sm:$0xff] }
  0x11   : > { %303 = vmatpush1.msra.mxu0 %v262_v6 }
  0x12   : > { %304 = vmatprep.subr.mxu0 %v261_v7 }
  0x13   : > { %305 = vmatpush1.msra.mxu0 %v260_v8 }
  0x14   : > { %459 = vmatmul.mubr.msk.f32.vlgmr.msra.gmra.mxu0 %vm270_vm0, %v259_v9 }
  0x89   : > { %v268_v10 = vpop.permute.xlu0 %267 }
  0xd4   : > { %v340_v11 = vpop.f32.mrf.mxu0 }
  0xd5   : > { %v341_v12 = vadd.f32 %v340_v11, %v268_v10 }
  0xd6   : > { %v342_v13 = vpop.f32.mrf.mxu0 }
  0xd7   : > { %vm345_vm1 = vcmp.ge.f32.partialorder %v341_v12, 0.0  ;;  %v347_v14 = vmul.f32 0.2, %v341_v12  ;;  %v343_v15 = vadd.f32 %v342_v13, %v268_v10 }
  0xd9   : > { %v349_v16 = vsel %vm345_vm1, %v341_v12, %v347_v14  ;;  %vm346_vm2 = vcmp.ge.f32.partialorder %v343_v15, 0.0  ;;  %v348_v17 = vmul.f32 0.2, %v343_v15 }
  0xda   : > { %351 = vst [vmem:[%s249_s7] sm:$0xff] %v349_v16 }
  0xdb   : > { %v350_v18 = vsel %vm346_vm2, %v343_v15, %v348_v17 }
  0xdc   : > { %352 = vst [vmem:[%s249_s7 + $0x8] sm:$0xff] %v350_v18 }
  0xdd PF: > { %s14_s17 = sadd.s32 1, %s513_s17   ;;  %s589_s15 = smov %s509_s16 }
  0xde   : > { %p11_p5 = scmp.ge.s32.totalorder %s14_s17, 4   ;;  %s590_s16 = smov %s592_s18 }
  0xe0   :  { %13 = sbr.rel (!%p11_p5) target bundleno = 2 (0x2), region = 69 }

</bundles_post_ra>
